<compile_context>
chip_gen: v5e
topology: v5e:2x2
jax: 0.10.0
libtpu: 0.0.40
codegen_flags: <defaults>
</compile_context>

<pallas_src>
import functools

import jax
import jax.numpy as jnp
from jax.experimental import pallas as pl
from jax.experimental.pallas import tpu as pltpu


# ------------------------- Pallas kernel -------------------------
def _rmsnorm_kernel(x_ref, w_ref, o_ref, *, eps):
    x = x_ref[...]                                    # (tm, D), input dtype
    xf = x.astype(jnp.float32)
    var = jnp.mean(xf * xf, axis=-1, keepdims=True)   # fp32 reduction over the lane axis
    normed = (xf * jax.lax.rsqrt(var + eps)).astype(x.dtype)  # cast BEFORE weight mul (HF order)
    o_ref[...] = (w_ref[...] * normed).astype(o_ref.dtype)


# ------------------------- tiling policy -------------------------
def _pick_row_tile(n_rows, d, itemsize):
    """Row tile: largest multiple of the dtype's sublane-packing factor such that one
    (tm, D) buffer stays under ~4 MiB (mem-bound sweet spot); at least one packed tile."""
    sub = 8 * max(1, 4 // itemsize)          # 8 (f32), 16 (bf16/f16), 32 (int8/fp8)
    budget_bytes = 4 * 1024 * 1024
    cap = max(1, budget_bytes // max(1, d * itemsize))
    tm = min(n_rows, cap)
    tm = max(sub, (tm // sub) * sub)
    return tm, sub


def mllama_rmsnorm(x, weight, eps):
    """RMSNorm over the last dim. x: (..., D), weight: (D,). Matches MllamaTextRMSNorm.

    `eps` is required — pass the model config's rms_norm_eps (HF class has no safe default)."""
    orig_shape = x.shape
    D = orig_shape[-1]
    x2 = x.reshape(-1, D)
    N = x2.shape[0]

    tm, sub = _pick_row_tile(N, D, x2.dtype.itemsize)

    # Ensure >= 2 grid steps when possible so a 2-TC chip (v7x) keeps both cores busy.
    if pl.cdiv(N, tm) < 2 and N > sub:
        half = pl.cdiv(N, 2)
        tm = max(sub, ((half + sub - 1) // sub) * sub)

    grid = (pl.cdiv(N, tm),)

    w2 = weight.reshape(1, D)
    out_dtype = jnp.result_type(x.dtype, weight.dtype)   # mirrors torch type promotion

    # VMEM limit: double-buffered in+out tiles + weight + headroom, clamped to 32-48 MiB
    # (above v5e's 16 MiB scoped default, well below v7x's 64 MiB physical per-TC VMEM).
    tile_bytes = tm * D * (x2.dtype.itemsize + jnp.dtype(out_dtype).itemsize)
    needed = 2 * tile_bytes + 2 * D * jnp.dtype(weight.dtype).itemsize + (4 << 20)
    vmem_limit = int(max(32 << 20, min(48 << 20, needed)))

    out = pl.pallas_call(
        functools.partial(_rmsnorm_kernel, eps=eps),
        out_shape=jax.ShapeDtypeStruct((N, D), out_dtype),
        grid=grid,
        in_specs=[
            pl.BlockSpec((tm, D), lambda i: (i, 0)),   # row tile of activations
            pl.BlockSpec((1, D), lambda i: (0, 0)),    # weight: fetched once, resident
        ],
        out_specs=pl.BlockSpec((tm, D), lambda i: (i, 0)),
        compiler_params=pltpu.CompilerParams(
            dimension_semantics=("parallel",),          # shards rows across TCs on v7x
            vmem_limit_bytes=vmem_limit,
        ),
    )(x2, w2)

    return out.reshape(orig_shape)


# ------------------------- pure-JAX reference -------------------------
def ref_rmsnorm(x, weight, eps):
    input_dtype = x.dtype
    xf = x.astype(jnp.float32)
    var = jnp.mean(xf * xf, axis=-1, keepdims=True)
    normed = (xf * jax.lax.rsqrt(var + eps)).astype(input_dtype)
    return weight * normed


# ------------------------- main -------------------------
if __name__ == "__main__":
    EPS = 1e-5  # pass the config's rms_norm_eps in real use
    key = jax.random.PRNGKey(0)
    k1, k2, k3, k4, k5 = jax.random.split(key, 5)

    # --- case 1: small fp32 (seq=8, hidden=32) ---
    D = 32
    x_fp32 = jax.random.normal(k1, (8, D), jnp.float32)
    w_fp32 = 1.0 + 0.01 * jax.random.normal(k2, (D,), jnp.float32)
    out1 = jax.block_until_ready(mllama_rmsnorm(x_fp32, w_fp32, EPS))
    ref1 = jax.block_until_ready(ref_rmsnorm(x_fp32, w_fp32, EPS))
    assert out1.shape == (8, D) and out1.dtype == jnp.float32
    assert jnp.allclose(out1, ref1, atol=1e-5, rtol=1e-5), "fp32 mismatch vs reference"

    # --- case 2: bf16 input with leading batch dim (HF dtype-ordering semantics) ---
    x_bf16 = jax.random.normal(k3, (2, 8, D), jnp.float32).astype(jnp.bfloat16)
    w_bf16 = w_fp32.astype(jnp.bfloat16)
    out2 = jax.block_until_ready(mllama_rmsnorm(x_bf16, w_bf16, EPS))
    ref2 = jax.block_until_ready(ref_rmsnorm(x_bf16, w_bf16, EPS))
    assert out2.shape == (2, 8, D) and out2.dtype == jnp.bfloat16
    assert jnp.allclose(out2.astype(jnp.float32), ref2.astype(jnp.float32),
                        atol=2e-2, rtol=2e-2), "bf16 mismatch vs reference"

    # --- case 3: lane-dense, multi-block tiled path (grid>1, parallel row axis) ---
    N3, D3 = 2048, 128
    x_big = jax.random.normal(k4, (N3, D3), jnp.float32)
    w_big = 1.0 + 0.01 * jax.random.normal(k5, (D3,), jnp.float32)
    out3 = jax.block_until_ready(mllama_rmsnorm(x_big, w_big, EPS))
    ref3 = jax.block_until_ready(ref_rmsnorm(x_big, w_big, EPS))
    assert out3.shape == (N3, D3) and out3.dtype == jnp.float32
    assert jnp.allclose(out3, ref3, atol=1e-5, rtol=1e-5), "tiled mismatch vs reference"

    # --- case 4: ragged N (exercises the cdiv grid / partial last block path) ---
    N4, D4 = 1000, 256
    x_rag = jax.random.normal(k4, (N4, D4), jnp.float32)
    w_rag = 1.0 + 0.01 * jax.random.normal(k5, (D4,), jnp.float32)
    out4 = jax.block_until_ready(mllama_rmsnorm(x_rag, w_rag, EPS))
    ref4 = jax.block_until_ready(ref_rmsnorm(x_rag, w_rag, EPS))
    assert out4.shape == (N4, D4) and out4.dtype == jnp.float32
    assert jnp.allclose(out4, ref4, atol=1e-5, rtol=1e-5), "ragged-N mismatch vs reference"

    print("KERNEL_OK")
</pallas_src>

<mosaic_0001>
module attributes {stable_mosaic.version = 11 : i64} {
  func.func @_rmsnorm_kernel(%arg0: i32, %arg1: memref<8x32xf32, #tpu.memory_space<vmem>>, %arg2: memref<1x32xf32, #tpu.memory_space<vmem>>, %arg3: memref<8x32xf32, #tpu.memory_space<vmem>>) attributes {dimension_semantics = [#tpu.dimension_semantics<parallel>], iteration_bounds = array<i64: 1>, scalar_prefetch = 0 : i64, scratch_operands = 0 : i64, tpu.core_type = #tpu.core_type<tc>, window_params = [{transform_indices = @transform_0, window_bounds = array<i64: 8, 32>}, {pipeline_mode = #tpu.pipeline_mode<synchronous>, transform_indices = @transform_1, window_bounds = array<i64: 1, 32>}, {transform_indices = @transform_2, window_bounds = array<i64: 8, 32>}]} {
    %c0 = arith.constant 0 : index
    %c0_0 = arith.constant 0 : index
    %0 = vector.load %arg1[%c0, %c0_0] : memref<8x32xf32, #tpu.memory_space<vmem>>, vector<8x32xf32>
    %1 = arith.mulf %0, %0 : vector<8x32xf32>
    %cst = arith.constant dense<0.000000e+00> : vector<8xf32>
    %2 = vector.multi_reduction <add>, %1, %cst [1] : vector<8x32xf32> to vector<8xf32>
    %3 = vector.shape_cast %2 : vector<8xf32> to vector<8x1xf32>
    %cst_1 = arith.constant 3.200000e+01 : f32
    %4 = vector.broadcast %cst_1 : f32 to vector<8x1xf32>
    %5 = arith.divf %3, %4 : vector<8x1xf32>
    %cst_2 = arith.constant 9.99999974E-6 : f32
    %6 = vector.broadcast %cst_2 : f32 to vector<8x1xf32>
    %7 = arith.addf %5, %6 : vector<8x1xf32>
    %8 = math.rsqrt %7 : vector<8x1xf32>
    %9 = vector.broadcast %8 : vector<8x1xf32> to vector<8x32xf32>
    %10 = arith.mulf %0, %9 : vector<8x32xf32>
    %c0_3 = arith.constant 0 : index
    %c0_4 = arith.constant 0 : index
    %11 = vector.load %arg2[%c0_3, %c0_4] : memref<1x32xf32, #tpu.memory_space<vmem>>, vector<1x32xf32>
    %12 = vector.broadcast %11 : vector<1x32xf32> to vector<8x32xf32>
    %13 = arith.mulf %12, %10 : vector<8x32xf32>
    %c0_5 = arith.constant 0 : index
    %c0_6 = arith.constant 0 : index
    %14 = vector.load %arg3[%c0_5, %c0_6] : memref<8x32xf32, #tpu.memory_space<vmem>>, vector<8x32xf32>
    tpu.vector_store %arg3[%c0_5, %c0_6], %13 {strides = array<i32>} : memref<8x32xf32, #tpu.memory_space<vmem>>, vector<8x32xf32>,
    return
  }
  func.func @transform_0(%arg0: i32) -> (i32, i32) {
    %c0_i32 = arith.constant 0 : i32
    %c0_i32_0 = arith.constant 0 : i32
    return %arg0, %c0_i32 : i32, i32
  }
  func.func @transform_1(%arg0: i32) -> (i32, i32) {
    %c0_i32 = arith.constant 0 : i32
    %c0_i32_0 = arith.constant 0 : i32
    %c0_i32_1 = arith.constant 0 : i32
    return %c0_i32, %c0_i32_0 : i32, i32
  }
  func.func @transform_2(%arg0: i32) -> (i32, i32) {
    %c0_i32 = arith.constant 0 : i32
    %c0_i32_0 = arith.constant 0 : i32
    return %arg0, %c0_i32 : i32, i32
  }
}

</mosaic_0001>

<bundles_post_ra>
// kernel: tpu_custom_call.1
= control target key start
LH: loop header
LB: loop body
LE: loop exit
PB: predicated region body
PF: predicated region fallthrough
CT: control target
= control target key end

     0   :  { %7 = vsyncpa [#allocation3], 0  ;;  %s207_s0 = inlined_call_operand.hbm [shape: f32[8,32], index: 0, kind: input, shape index: {}]   ;;  %s208_s1 = inlined_call_operand.hbm [shape: f32[1,32], index: 1, kind: input, shape index: {}]   ;;  %s209_s2 = inlined_call_operand.hbm [shape: f32[8,32], index: 2, kind: output, shape index: {}]  }
   0x1   :  { %8 = vsyncpa [#allocation6], 0 }
   0x2   :  { %9 = vsyncpa [#allocation4], 0  ;;  %s15_s11 = sshll.u32 %s207_s0, 4  ;;  %s177_s12 = smov [#allocation2]   ;;  %s16_s11 = int_to_ptr.hbm [resolvable:$true] %s15_s11 }
   0x3   :  { %s17_s13 = sshll.u32 %s177_s12, 4  ;;  %s26_s16 = sshll.u32 %s208_s1, 4  ;;  %s18_s13 = int_to_ptr.vmem [resolvable:$true] %s17_s13  ;;  %s27_s16 = int_to_ptr.hbm [resolvable:$true] %s26_s16 }
   0x4   :  { %20 = dma.hbm_to_vmem [thread:$0]  %s16_s11, 128, %s18_s13, [#allocation3]  }
   0x5   :  { %s178_s17 = smov [#allocation5]  }
   0x6   :  { %s28_s18 = sshll.u32 %s178_s17, 4  ;;  %s29_s18 = int_to_ptr.vmem [resolvable:$true] %s28_s18 }
   0x7   :  { %31 = dma.hbm_to_vmem [thread:$0]  %s27_s16, 16, %s29_s18, [#allocation6]  }
   0x8   :  { %171 = dma.done.wait [#allocation3], 128  }
   0x9   :  { %172 = vsyncadd [#allocation3], 4294967168 }
   0xa   :  { %173 = dma.done.wait [#allocation6], 16  }
   0xb   :  { %174 = vsyncadd [#allocation6], 4294967280  ;;  %v40_v0 = vld [vmem:[#allocation2] sm:$0xff]  ;;  %vm42_vm0 = vcmask 261120   ;;  %v179_v3 = vmov 32.0   ;;  %s180_s0 = smov [#allocation7]  }
   0xc   :  { %v41_v1 = vmul.f32 %v40_v0, %v40_v0  ;;  %95 = vrcp.f32 %v179_v3  ;;  %v94_v19 = vld [vmem:[#allocation5] ss:$0 sm:$0xff]  ;;  %s77_s1 = sshll.u32 %s180_s0, 4  ;;  %s79_s21 = sshll.u32 %s209_s2, 4  ;;  %s78_s1 = int_to_ptr.vmem [resolvable:$true] %s77_s1  ;;  %s80_s21 = int_to_ptr.hbm [resolvable:$true] %s79_s21 }
   0xe   :  { %v43_v2 = vsel %vm42_vm0, %v41_v1, 0.0 }
   0xf   :  { %44 = vadd.xlane.f32.xlu0 %v43_v2 }
  0x12   :  { %v96_v4 = vpop.eup %95 }
  0x13   :  { %v47_v5 = vmul.f32 32.0, %v96_v4  ;;  %vm51_vm1 = vweird.f32 %v96_v4 }
  0x15   :  { %v48_v6 = vsub.f32 1.0, %v47_v5 }
  0x17   :  { %v49_v7 = vmul.f32 %v96_v4, %v48_v6 }
  0x19   :  { %v50_v8 = vadd.f32 %v96_v4, %v49_v7 }
  0x1b   :  { %v52_v9 = vsel %vm51_vm1, %v96_v4, %v50_v8 }
  0x82   :  { %v45_v10 = vpop.xlane.xlu0 %44 }
  0x83   :  { %v53_v11 = vmul.f32 %v52_v9, %v45_v10 }
  0x85   :  { %v54_v12 = vadd.f32 1e-05, %v53_v11 }
  0x87   :  { %97 = vrsqrt.f32 %v54_v12  ;;  %vm61_vm3 = vweird.f32 %v54_v12 }
  0x8d   :  { %v98_v13 = vpop.eup %97 }
  0x8e   :  { %v56_v14 = vmul.f32 %v98_v13, %v54_v12  ;;  %vm62_vm2 = vweird.f32 %v98_v13 }
  0x8f   :  { %vm63_vm4 = vmor %vm61_vm3, %vm62_vm2 }
  0x90   :  { %v57_v15 = vmul.f32 %v98_v13, %v56_v14 }
  0x92   :  { %v58_v16 = vmul.f32 0.5, %v57_v15 }
  0x94   :  { %v59_v17 = vsub.f32 1.5, %v58_v16 }
  0x96   :  { %v60_v18 = vmul.f32 %v98_v13, %v59_v17 }
  0x98   :  { %v64_v20 = vsel %vm63_vm4, %v98_v13, %v60_v18 }
  0x99   :  { %v65_v21 = vmul.f32 %v64_v20, %v40_v0 }
  0x9b   :  { %v70_v22 = vmul.f32 %v94_v19, %v65_v21 }
  0x9d   :  { %71 = vst.msk [vmem:[#allocation7] sm:$0xff] %vm42_vm0, %v70_v22 }
  0x9e   :  { %82 = dma.vmem_to_hbm [thread:$0]  %s78_s1, 128, %s80_s21, [#allocation4]  }
  0x9f   :  { %175 = dma.done.wait [#allocation4], 128  }
  0xa0   :  { %176 = vsyncadd [#allocation4], 4294967168 }
  0xa1   :  { %87 = vsyncpa [#allocation3], 1 }
  0xa2   :  { %88 = vsyncpa [#allocation6], 1 }
  0xa3   :  { %89 = vsyncpa [#allocation4], 1 }

</bundles_post_ra>
